<compile_context>
chip_gen: v6e
topology: v6e:2x2x1
jax: 0.10.0
libtpu: 0.0.40
codegen_flags: <defaults>
</compile_context>

<pallas_src>
import jax
import jax.numpy as jnp
from jax.experimental import pallas as pl
from jax.experimental.pallas import tpu as pltpu


def _round_up(v, m):
    return -(-v // m) * m


def _largest_divisor(n, candidates):
    for c in candidates:
        if n % c == 0:
            return c
    return n


def _clamp_vmem(nbytes):
    # generous headroom, never below 16 MiB, never above v7x physical (64 MiB)
    return int(min(max(nbytes, 16 << 20), 64 << 20))


# --------------------------------------------------------------------------
# Non-recurrent projections: tiled bf16 GEMM + bias with a K reduction axis
# and an f32 VMEM accumulator.  M/N axes are "parallel" (megacore shardable).
# --------------------------------------------------------------------------
def _gemm_bias_kernel(x_ref, w_ref, b_ref, o_ref, acc_ref):
    k = pl.program_id(2)

    @pl.when(k == 0)
    def _():
        acc_ref[...] = jnp.zeros_like(acc_ref)

    acc_ref[...] += jnp.dot(x_ref[...], w_ref[...],
                            preferred_element_type=jnp.float32)

    @pl.when(k == pl.num_programs(2) - 1)
    def _():
        o_ref[...] = (acc_ref[...] + b_ref[...]).astype(o_ref.dtype)


def _gemm_bias(x, w, b, *, out_dtype, tile_m, tile_n, tile_k):
    M, K = x.shape
    _, N = w.shape
    grid = (M // tile_m, N // tile_n, K // tile_k)
    out_bytes = jnp.dtype(out_dtype).itemsize
    vmem = _clamp_vmem(
        2 * (2 * (tile_m * tile_k * x.dtype.itemsize
                  + tile_k * tile_n * w.dtype.itemsize
                  + tile_n * 4)
             + 2 * tile_m * tile_n * out_bytes
             + tile_m * tile_n * 4)
        + (4 << 20))
    return pl.pallas_call(
        _gemm_bias_kernel,
        out_shape=jax.ShapeDtypeStruct((M, N), out_dtype),
        grid_spec=pltpu.PrefetchScalarGridSpec(
            num_scalar_prefetch=0,
            grid=grid,
            in_specs=[
                pl.BlockSpec((tile_m, tile_k), lambda i, j, k: (i, k)),
                pl.BlockSpec((tile_k, tile_n), lambda i, j, k: (k, j)),
                pl.BlockSpec((1, tile_n), lambda i, j, k: (0, j)),
            ],
            out_specs=pl.BlockSpec((tile_m, tile_n), lambda i, j, k: (i, j)),
            scratch_shapes=[pltpu.VMEM((tile_m, tile_n), jnp.float32)],
        ),
        compiler_params=pltpu.CompilerParams(
            dimension_semantics=("parallel", "parallel", "arbitrary"),
            vmem_limit_bytes=vmem),
    )(x, w, b)


# --------------------------------------------------------------------------
# Sequential LSTM recurrence.
#   grid = (batch_half "parallel", time_chunk "arbitrary")
# gates_ref already contains x_t @ W_ih + bias (bf16) for every step in the
# chunk.  W_hh lives in HBM (ANY) and is DMA'd once per core into a
# single-buffered VMEM scratch at the first chunk.  h/c are carried through
# the unrolled step loop as f32 values and written back to scratch once per
# chunk (so each step issues a single store: the h_out slice).
# --------------------------------------------------------------------------
def _lstm_recurrent_kernel(gates_ref, whh_hbm, h_out_ref,
                           whh_vmem, h_ref, c_ref, dma_sem):
    chunk = pl.program_id(1)

    @pl.when(chunk == 0)
    def _():
        h_ref[...] = jnp.zeros_like(h_ref)
        c_ref[...] = jnp.zeros_like(c_ref)
        cp = pltpu.make_async_copy(whh_hbm, whh_vmem, dma_sem)
        cp.start()
        cp.wait()

    H = h_ref.shape[1]              # H_pad (multiple of 128) -> lane-aligned gate slots
    t_chunk = gates_ref.shape[0]

    def step(s, carry):
        h_prev, c_prev = carry
        g = gates_ref[s].astype(jnp.float32) + jnp.dot(
            h_prev.astype(jnp.bfloat16), whh_vmem[...],
            preferred_element_type=jnp.float32)
        # Padded gate layout is (i, f, o, g): one sigmoid over 3*H, one tanh over H.
        ifo = jax.nn.sigmoid(g[:, :3 * H])
        g_g = jnp.tanh(g[:, 3 * H:])
        i_g = ifo[:, 0 * H:1 * H]
        f_g = ifo[:, 1 * H:2 * H]
        o_g = ifo[:, 2 * H:3 * H]
        c_new = f_g * c_prev + i_g * g_g
        h_new = o_g * jnp.tanh(c_new)
        h_out_ref[s] = h_new.astype(h_out_ref.dtype)
        return (h_new, c_new)

    # Short fixed trip count -> fully unrolled for LLO scheduler visibility.
    h_last, c_last = jax.lax.fori_loop(
        0, t_chunk, step, (h_ref[...], c_ref[...]), unroll=True)
    h_ref[...] = h_last
    c_ref[...] = c_last


# --------------------------------------------------------------------------
# Wrapper: PyTorch batch_first semantics at the boundary.
#   features (B, E), captions (B, L) int32  ->  logits (B, L, V)
# --------------------------------------------------------------------------
def decoder_rnn_forward(features, captions, params, *, t_chunk=16):
    emb_table = params["embed"]            # (V, E)
    w_ih = params["w_ih"]                  # (E, 4H)  == weight_ih_l0.T
    w_hh = params["w_hh"]                  # (H, 4H)  == weight_hh_l0.T
    bias = params["bias"]                  # (1, 4H)  == bias_ih_l0 + bias_hh_l0
    w_lin = params["w_lin"]                # (H, V)   == linear.weight.T
    b_lin = params["b_lin"]                # (1, V)

    B, E = features.shape
    H = w_hh.shape[0]
    V = w_lin.shape[1]
    T = captions.shape[1]                  # 1 feature step + (L-1) token steps

    # ---- glue: embedding gather + concat, time-major ----
    emb = jnp.take(emb_table, captions[:, :-1], axis=0)        # (B, T-1, E)
    x = jnp.concatenate([features[:, None, :], emb], axis=1)   # (B, T, E)
    x_tm = jnp.transpose(x, (1, 0, 2))                         # (T, B, E)

    # ---- pad to hardware tiles ----
    B_p = _round_up(B, 8)
    E_p = _round_up(E, 128)
    H_p = _round_up(H, 128)
    V_p = _round_up(V, 512)                # 512-wide, lane-dense vocab tiles
    t_chunk = max(8, min(t_chunk, _round_up(T, 8)))
    T_p = _round_up(T, t_chunk)

    x_p = jnp.zeros((T_p, B_p, E_p), jnp.float32).at[:T, :B, :E].set(x_tm)
    x_p = x_p.astype(jnp.bfloat16)

    # Lane-aligned gate layout, reordered to (i, f, o, g).  Padded gate lanes
    # get bias 0 -> i=f=o=0.5, g=0, so padded h/c lanes stay exactly 0.
    w_ih_p = jnp.zeros((E_p, 4 * H_p), jnp.float32)
    w_hh_p = jnp.zeros((H_p, 4 * H_p), jnp.float32)
    bias_p = jnp.zeros((1, 4 * H_p), jnp.float32)
    for dst, src in enumerate((0, 1, 3, 2)):      # PyTorch column order is (i, f, g, o)
        w_ih_p = w_ih_p.at[:E, dst * H_p:dst * H_p + H].set(w_ih[:, src * H:(src + 1) * H])
        w_hh_p = w_hh_p.at[:H, dst * H_p:dst * H_p + H].set(w_hh[:, src * H:(src + 1) * H])
        bias_p = bias_p.at[:, dst * H_p:dst * H_p + H].set(bias[:, src * H:(src + 1) * H])
    w_ih_p = w_ih_p.astype(jnp.bfloat16)
    w_hh_p = w_hh_p.astype(jnp.bfloat16)
    w_lin_p = (jnp.zeros((H_p, V_p), jnp.float32)
               .at[:H, :V].set(w_lin).astype(jnp.bfloat16))
    b_lin_p = jnp.zeros((1, V_p), jnp.float32).at[:, :V].set(b_lin)

    # GEMM tiling decoupled from the recurrence chunking: pad rows to a
    # multiple of 128 so the MXU systolic rows are filled.
    M = T_p * B_p
    M_g = _round_up(M, 128)
    tile_m = _largest_divisor(M_g, (512, 256, 128))
    tile_n_g = _largest_divisor(4 * H_p, (512, 256, 128))
    tile_n_v = _largest_divisor(V_p, (512, 256, 128))
    tile_k_e = E_p if E_p <= 1024 else _largest_divisor(E_p, (1024, 512, 256, 128))
    tile_k_h = H_p if H_p <= 1024 else _largest_divisor(H_p, (1024, 512, 256, 128))

    # ---- 1) input projection for ALL time steps: one parallel bf16 GEMM ----
    x_flat = x_p.reshape(M, E_p)
    if M_g != M:
        x_flat = jnp.concatenate(
            [x_flat, jnp.zeros((M_g - M, E_p), x_flat.dtype)], axis=0)
    gates_pre = _gemm_bias(
        x_flat, w_ih_p, bias_p, out_dtype=jnp.bfloat16,
        tile_m=tile_m, tile_n=tile_n_g, tile_k=tile_k_e,
    )[:M].reshape(T_p, B_p, 4 * H_p)

    # ---- 2) sequential recurrence, t_chunk steps per grid iteration ----
    n_splits = 2 if (B_p % 16 == 0) else 1     # v7x: one batch half per TensorCore
    B_half = B_p // n_splits
    n_chunks = T_p // t_chunk
    vmem_rec = _clamp_vmem(
        2 * (2 * t_chunk * B_half * 4 * H_p * 2     # gates blocks (bf16, 2 buffers)
             + 2 * t_chunk * B_half * H_p * 2       # h_out blocks (bf16, 2 buffers)
             + H_p * 4 * H_p * 2                    # resident W_hh (bf16, 1 buffer)
             + 2 * B_half * H_p * 4)                # h/c state (f32)
        + (4 << 20))
    h_all = pl.pallas_call(
        _lstm_recurrent_kernel,
        out_shape=jax.ShapeDtypeStruct((T_p, B_p, H_p), jnp.bfloat16),
        grid_spec=pltpu.PrefetchScalarGridSpec(
            num_scalar_prefetch=0,
            grid=(n_splits, n_chunks),
            in_specs=[
                pl.BlockSpec((t_chunk, B_half, 4 * H_p), lambda b, t: (t, b, 0)),
                pl.BlockSpec(memory_space=pl.ANY),      # W_hh stays in HBM; DMA'd once
            ],
            out_specs=pl.BlockSpec((t_chunk, B_half, H_p), lambda b, t: (t, b, 0)),
            scratch_shapes=[
                pltpu.VMEM((H_p, 4 * H_p), jnp.bfloat16),   # single-buffered W_hh
                pltpu.VMEM((B_half, H_p), jnp.float32),     # h state
                pltpu.VMEM((B_half, H_p), jnp.float32),     # c state
                pltpu.SemaphoreType.DMA(()),
            ],
        ),
        compiler_params=pltpu.CompilerParams(
            dimension_semantics=("parallel", "arbitrary"),  # true recurrence sequential
            vmem_limit_bytes=vmem_rec),
    )(gates_pre, w_hh_p)

    # ---- 3) vocab projection for ALL time steps: one parallel, V-tiled bf16 GEMM ----
    h_flat = h_all.reshape(M, H_p)
    if M_g != M:
        h_flat = jnp.concatenate(
            [h_flat, jnp.zeros((M_g - M, H_p), h_flat.dtype)], axis=0)
    logits_p = _gemm_bias(
        h_flat, w_lin_p, b_lin_p, out_dtype=jnp.float32,
        tile_m=tile_m, tile_n=tile_n_v, tile_k=tile_k_h,
    )[:M].reshape(T_p, B_p, V_p)

    # ---- unpad, back to batch_first ----
    return jnp.transpose(logits_p[:T, :B, :V], (1, 0, 2))    # (B, T, V)


# --------------------------------------------------------------------------
# Pure-JAX f32 reference (mirrors the PyTorch module) for verification.
# --------------------------------------------------------------------------
def _reference_forward(features, captions, params):
    emb = jnp.take(params["embed"], captions[:, :-1], axis=0)
    x = jnp.concatenate([features[:, None, :], emb], axis=1)   # (B, T, E)
    H = params["w_hh"].shape[0]
    B = x.shape[0]

    def step(carry, x_t):
        h, c = carry
        gates = x_t @ params["w_ih"] + h @ params["w_hh"] + params["bias"][0]
        i = jax.nn.sigmoid(gates[:, 0 * H:1 * H])
        f = jax.nn.sigmoid(gates[:, 1 * H:2 * H])
        g = jnp.tanh(gates[:, 2 * H:3 * H])
        o = jax.nn.sigmoid(gates[:, 3 * H:4 * H])
        c = f * c + i * g
        h = o * jnp.tanh(c)
        return (h, c), h

    init = (jnp.zeros((B, H), jnp.float32), jnp.zeros((B, H), jnp.float32))
    _, hs = jax.lax.scan(step, init, jnp.transpose(x, (1, 0, 2)))
    hs = jnp.transpose(hs, (1, 0, 2))                          # (B, T, H)
    return hs @ params["w_lin"] + params["b_lin"][0]


def init_params(key, embed_size, hidden_size, vocab_size):
    ks = jax.random.split(key, 6)
    s = 0.1
    return {
        "embed": jax.random.normal(ks[0], (vocab_size, embed_size), jnp.float32) * s,
        "w_ih": jax.random.normal(ks[1], (embed_size, 4 * hidden_size), jnp.float32) * s,
        "w_hh": jax.random.normal(ks[2], (hidden_size, 4 * hidden_size), jnp.float32) * s,
        "bias": jax.random.normal(ks[3], (1, 4 * hidden_size), jnp.float32) * s,
        "w_lin": jax.random.normal(ks[4], (hidden_size, vocab_size), jnp.float32) * s,
        "b_lin": jax.random.normal(ks[5], (1, vocab_size), jnp.float32) * s,
    }


if __name__ == "__main__":
    # Small shapes consistent with the module's forward.
    B, L = 2, 8                 # batch, caption length (T = L after concat)
    EMBED, HIDDEN, VOCAB = 32, 32, 128

    key = jax.random.PRNGKey(0)
    k_feat, k_cap, k_par = jax.random.split(key, 3)

    params = init_params(k_par, EMBED, HIDDEN, VOCAB)
    features = jax.random.normal(k_feat, (B, EMBED), jnp.float32)
    captions = jax.random.randint(k_cap, (B, L), 0, VOCAB, jnp.int32)

    out = decoder_rnn_forward(features, captions, params)
    out = jax.block_until_ready(out)

    ref = _reference_forward(features, captions, params)
    assert out.shape == (B, L, VOCAB), out.shape
    # bf16 MXU operands + bf16 intermediates vs. an f32 reference -> loosened tolerance.
    assert jnp.allclose(out, ref, atol=3e-2, rtol=3e-2), \
        float(jnp.max(jnp.abs(out - ref)))

    # TODO(synk): `sample()` greedy decoding loop (argmax feedback with .item()) is
    # host-side Python control flow in the PyTorch module and is not implemented here.
    print("KERNEL_OK")
</pallas_src>

<mosaic_0001>
module attributes {stable_mosaic.version = 11 : i64} {
  func.func @_gemm_bias_kernel(%arg0: i32, %arg1: i32, %arg2: i32, %arg3: memref<128x128xbf16, #tpu.memory_space<vmem>>, %arg4: memref<128x512xbf16, #tpu.memory_space<vmem>>, %arg5: memref<1x512xf32, #tpu.memory_space<vmem>>, %arg6: memref<128x512xbf16, #tpu.memory_space<vmem>>, %arg7: memref<128x512xf32, #tpu.memory_space<vmem>>) attributes {dimension_semantics = [#tpu.dimension_semantics<parallel>, #tpu.dimension_semantics<parallel>, #tpu.dimension_semantics<arbitrary>], iteration_bounds = array<i64: 1, 1, 1>, scalar_prefetch = 0 : i64, scratch_operands = 1 : i64, tpu.core_type = #tpu.core_type<tc>, window_params = [{transform_indices = @transform_0, window_bounds = array<i64: 128, 128>}, {transform_indices = @transform_1, window_bounds = array<i64: 128, 512>}, {transform_indices = @transform_2, window_bounds = array<i64: 1, 512>}, {transform_indices = @transform_3, window_bounds = array<i64: 128, 512>}]} {
    %c0_i32 = arith.constant 0 : i32
    %0 = arith.cmpi eq, %arg2, %c0_i32 : i32
    %1 = arith.extui %0 : i1 to i32
    %c0_i32_0 = arith.constant 0 : i32
    %2 = arith.cmpi ne, %1, %c0_i32_0 : i32
    scf.if %2 {
      %cst_10 = arith.constant 0.000000e+00 : f32
      %12 = vector.broadcast %cst_10 : f32 to vector<128x512xf32>
      %c0_11 = arith.constant 0 : index
      %c0_12 = arith.constant 0 : index
      %13 = vector.load %arg7[%c0_11, %c0_12] : memref<128x512xf32, #tpu.memory_space<vmem>>, vector<128x512xf32>
      tpu.vector_store %arg7[%c0_11, %c0_12], %12 {strides = array<i32>} : memref<128x512xf32, #tpu.memory_space<vmem>>, vector<128x512xf32>,
    } else {
    }
    %c0 = arith.constant 0 : index
    %c0_1 = arith.constant 0 : index
    %3 = vector.load %arg7[%c0, %c0_1] : memref<128x512xf32, #tpu.memory_space<vmem>>, vector<128x512xf32>
    %c0_2 = arith.constant 0 : index
    %c0_3 = arith.constant 0 : index
    %4 = vector.load %arg3[%c0_2, %c0_3] : memref<128x128xbf16, #tpu.memory_space<vmem>>, vector<128x128xbf16>
    %c0_4 = arith.constant 0 : index
    %c0_5 = arith.constant 0 : index
    %5 = vector.load %arg4[%c0_4, %c0_5] : memref<128x512xbf16, #tpu.memory_space<vmem>>, vector<128x512xbf16>
    %cst = arith.constant dense<0.000000e+00> : vector<128x512xf32>
    %6 = tpu.matmul %4, %5, %cst {dimension_numbers = #tpu.dot_dimension_numbers<[1], [0], [0], [1], [0, 0, 1, 1], [], []>} : vector<128x128xbf16>, vector<128x512xbf16>, vector<128x512xf32> -> vector<128x512xf32>
    %7 = arith.addf %3, %6 : vector<128x512xf32>
    %c0_6 = arith.constant 0 : index
    %c0_7 = arith.constant 0 : index
    %8 = vector.load %arg7[%c0_6, %c0_7] : memref<128x512xf32, #tpu.memory_space<vmem>>, vector<128x512xf32>
    tpu.vector_store %arg7[%c0_6, %c0_7], %7 {strides = array<i32>} : memref<128x512xf32, #tpu.memory_space<vmem>>, vector<128x512xf32>,
    %c0_i32_8 = arith.constant 0 : i32
    %9 = arith.cmpi eq, %arg2, %c0_i32_8 : i32
    %10 = arith.extui %9 : i1 to i32
    %c0_i32_9 = arith.constant 0 : i32
    %11 = arith.cmpi ne, %10, %c0_i32_9 : i32
    scf.if %11 {
      %c0_10 = arith.constant 0 : index
      %c0_11 = arith.constant 0 : index
      %12 = vector.load %arg7[%c0_10, %c0_11] : memref<128x512xf32, #tpu.memory_space<vmem>>, vector<128x512xf32>
      %c0_12 = arith.constant 0 : index
      %c0_13 = arith.constant 0 : index
      %13 = vector.load %arg5[%c0_12, %c0_13] : memref<1x512xf32, #tpu.memory_space<vmem>>, vector<1x512xf32>
      %14 = vector.broadcast %13 : vector<1x512xf32> to vector<128x512xf32>
      %15 = arith.addf %12, %14 : vector<128x512xf32>
      %16 = arith.truncf %15 : vector<128x512xf32> to vector<128x512xbf16>
      %c0_14 = arith.constant 0 : index
      %c0_15 = arith.constant 0 : index
      %17 = vector.load %arg6[%c0_14, %c0_15] : memref<128x512xbf16, #tpu.memory_space<vmem>>, vector<128x512xbf16>
      tpu.vector_store %arg6[%c0_14, %c0_15], %16 {strides = array<i32>} : memref<128x512xbf16, #tpu.memory_space<vmem>>, vector<128x512xbf16>,
    } else {
    }
    return
  }
  func.func @transform_0(%arg0: i32, %arg1: i32, %arg2: i32) -> (i32, i32) {
    %c0_i32 = arith.constant 0 : i32
    return %arg0, %arg2 : i32, i32
  }
  func.func @transform_1(%arg0: i32, %arg1: i32, %arg2: i32) -> (i32, i32) {
    %c0_i32 = arith.constant 0 : i32
    return %arg2, %arg1 : i32, i32
  }
  func.func @transform_2(%arg0: i32, %arg1: i32, %arg2: i32) -> (i32, i32) {
    %c0_i32 = arith.constant 0 : i32
    %c0_i32_0 = arith.constant 0 : i32
    return %c0_i32, %arg1 : i32, i32
  }
  func.func @transform_3(%arg0: i32, %arg1: i32, %arg2: i32) -> (i32, i32) {
    %c0_i32 = arith.constant 0 : i32
    return %arg0, %arg1 : i32, i32
  }
}

</mosaic_0001>

<bundles_post_ra>
// kernel: tpu_custom_call.1
= control target key start
LH: loop header
LB: loop body
LE: loop exit
PB: predicated region body
PF: predicated region fallthrough
CT: control target
= control target key end

     0   :  { %8 = vsyncpa [#allocation4], 0  ;;  %s1582_s0 = inlined_call_operand.hbm [shape: bf16[128,128], index: 0, kind: input, shape index: {}]   ;;  %s1583_s1 = inlined_call_operand.hbm [shape: bf16[128,512], index: 1, kind: input, shape index: {}]   ;;  %s1584_s2 = inlined_call_operand.hbm [shape: f32[1,512], index: 2, kind: input, shape index: {}]   ;;  %s1585_s3 = inlined_call_operand.hbm [shape: bf16[128,512], index: 3, kind: output, shape index: {}]  }
   0x1   :  { %9 = vsyncpa [#allocation7], 0 }
   0x2   :  { %10 = vsyncpa [#allocation5], 0  ;;  %s1447_s12 = smov [#allocation6]  }
   0x3   :  { %s28_s13 = sshll.u32 %s1447_s12, 4  ;;  %s29_s13 = int_to_ptr.vmem [resolvable:$true] %s28_s13 }
   0x4   :  { %s1369_s14 = scalar_lea.vmem %s29_s13, 4096  ;;  %p1374_p1 = scmp.lt.s32.totalorder %s29_s13, %s29_s13 }
   0x5   :  { %p1370_p0 = scmp.ne.s32.totalorder %s29_s13, %s1369_s14  ;;  %p1375_p2 = scmp.lt.s32.totalorder %s1369_s14, %s1369_s14 }
   0x7   :  { %p1376_p3 = por %p1375_p2, %p1374_p1 }
   0x9   :  { %p1377_p4 = pnand %p1376_p3, %p1370_p0 }
   0xb   :  { %1380 = shalt.err (!%p1377_p4)
}
   0xc   :  { %s1448_s15 = smov 256   ;;  %s1449_s16 = smov 16  }
   0xd   :  { %34 = dma.hbm_to_vmem [thread:$0]  %s1583_s1, 4096, %s29_s13, [#allocation7], %s1448_s15, %s1448_s15, %s1449_s16  }
   0xe   :  { %s1450_s19 = smov [#allocation3]  }
   0xf   :  { %s16_s20 = sshll.u32 %s1450_s19, 4  ;;  %s17_s20 = int_to_ptr.vmem [resolvable:$true] %s16_s20 }
  0x10   :  { %s1389_s21 = scalar_lea.vmem %s17_s20, 1024  ;;  %p1394_p6 = scmp.lt.s32.totalorder %s17_s20, %s17_s20 }
  0x11   :  { %p1390_p5 = scmp.ne.s32.totalorder %s17_s20, %s1389_s21  ;;  %p1395_p7 = scmp.lt.s32.totalorder %s1389_s21, %s1389_s21 }
  0x13   :  { %p1396_p8 = por %p1395_p7, %p1394_p6 }
  0x15   :  { %p1397_p9 = pnand %p1396_p8, %p1390_p5 }
  0x17   :  { %1400 = shalt.err (!%p1397_p9)
}
  0x18   :  { %s1451_s22 = smov 64   ;;  %s1452_s23 = smov 4  }
  0x19   :  { %22 = dma.hbm_to_vmem [thread:$0]  %s1582_s0, 1024, %s17_s20, [#allocation4], %s1451_s22, %s1451_s22, %s1452_s23  }
  0x1a   :  { %s1453_s26 = smov [#allocation8]  }
  0x1b   :  { %s41_s27 = sshll.u32 %s1453_s26, 4  ;;  %s42_s27 = int_to_ptr.vmem [resolvable:$true] %s41_s27 }
  0x1c   :  { %s1409_s1 = scalar_lea.vmem %s42_s27, 64  ;;  %p1414_p11 = scmp.lt.s32.totalorder %s42_s27, %s42_s27 }
  0x1d   :  { %p1410_p10 = scmp.ne.s32.totalorder %s42_s27, %s1409_s1  ;;  %p1415_p12 = scmp.lt.s32.totalorder %s1409_s1, %s1409_s1 }
  0x1f   :  { %p1416_p13 = por %p1415_p12, %p1414_p11 }
  0x21   :  { %p1417_p0 = pnand %p1416_p13, %p1410_p10 }
  0x23   :  { %1420 = shalt.err (!%p1417_p0)
}
  0x24   :  { %44 = dma.hbm_to_vmem [thread:$0]  %s1584_s2, 64, %s42_s27, [#allocation7]  }
  0x25   :  { %1441 = dma.done.wait [#allocation4], 1024  }
  0x26   :  { %1442 = vsyncadd [#allocation4], 4294966272 }
  0x27   :  { %1443 = dma.done.wait [#allocation7], 4160  }
  0x28   :  { %1444 = vsyncadd [#allocation7], 4294963136  ;;  %v1454_v0 = vmov 0   ;;  %v1305_v1 = vld [vmem:[#allocation6 + $0xe4] ss:$16 sps:$4 sm:$0xff]   ;;  %v1354_v34 = vld [vmem:[#allocation3 + $0x8] sm:$0xff]   ;;  %v866_v41 = vlaneseq }
  0x29   :  { %475 = vmatprep.mubr.bf16.mxu0 %v1454_v0  ;;  %588 = vmatprep.mubr.bf16.mxu1 %v1454_v0  ;;  %v1307_v2 = vld [vmem:[#allocation6 + $0xec] ss:$16 sps:$4 sm:$0xff]   ;;  %v1309_v3 = vld [vmem:[#allocation6 + $0xe0] ss:$16 sps:$4 sm:$0xff]   ;;  %v1310_v4 = vld [vmem:[#allocation6 + $0xe8] ss:$16 sps:$4 sm:$0xff]  }
  0x2a   :  { %443 = vmatprep.subr.bf16.mxu0 %v1305_v1  ;;  %556 = vmatprep.subr.bf16.mxu1 %v1307_v2  ;;  %v1311_v5 = vld [vmem:[#allocation6 + $0xc4] ss:$16 sps:$4 sm:$0xff]   ;;  %v1313_v6 = vld [vmem:[#allocation6 + $0xcc] ss:$16 sps:$4 sm:$0xff]   ;;  %v1315_v7 = vld [vmem:[#allocation6 + $0xc0] ss:$16 sps:$4 sm:$0xff]  }
  0x2b   :  { %444 = vmatpush1.bf16.msra.mxu0 %v1309_v3  ;;  %557 = vmatpush1.bf16.msra.mxu1 %v1310_v4  ;;  %v1316_v8 = vld [vmem:[#allocation6 + $0xc8] ss:$16 sps:$4 sm:$0xff]   ;;  %v1317_v9 = vld [vmem:[#allocation6 + $0xa4] ss:$16 sps:$4 sm:$0xff]   ;;  %v1319_v10 = vld [vmem:[#allocation6 + $0xac] ss:$16 sps:$4 sm:$0xff]  }
  0x2c   :  { %445 = vmatprep.subr.bf16.mxu0 %v1311_v5  ;;  %558 = vmatprep.subr.bf16.mxu1 %v1313_v6  ;;  %v1321_v11 = vld [vmem:[#allocation6 + $0xa0] ss:$16 sps:$4 sm:$0xff]   ;;  %v1322_v12 = vld [vmem:[#allocation6 + $0xa8] ss:$16 sps:$4 sm:$0xff]   ;;  %v1323_v13 = vld [vmem:[#allocation6 + $0x84] ss:$16 sps:$4 sm:$0xff]  }
  0x2d   :  { %v1325_v14 = vld [vmem:[#allocation6 + $0x8c] ss:$16 sps:$4 sm:$0xff]   ;;  %v1327_v15 = vld [vmem:[#allocation6 + $0x80] ss:$16 sps:$4 sm:$0xff]   ;;  %v1328_v16 = vld [vmem:[#allocation6 + $0x88] ss:$16 sps:$4 sm:$0xff]  }
  0x2e   :  { %v1329_v17 = vld [vmem:[#allocation6 + $0x64] ss:$16 sps:$4 sm:$0xff]   ;;  %v1331_v18 = vld [vmem:[#allocation6 + $0x6c] ss:$16 sps:$4 sm:$0xff]   ;;  %v1333_v19 = vld [vmem:[#allocation6 + $0x60] ss:$16 sps:$4 sm:$0xff]  }
  0x2f   :  { %446 = vmatpush1.bf16.msra.mxu0 %v1315_v7  ;;  %559 = vmatpush1.bf16.msra.mxu1 %v1316_v8  ;;  %v1334_v20 = vld [vmem:[#allocation6 + $0x68] ss:$16 sps:$4 sm:$0xff]   ;;  %v1335_v21 = vld [vmem:[#allocation6 + $0x44] ss:$16 sps:$4 sm:$0xff]   ;;  %v1337_v22 = vld [vmem:[#allocation6 + $0x4c] ss:$16 sps:$4 sm:$0xff]  }
  0x30   :  { %447 = vmatprep.subr.bf16.mxu0 %v1317_v9  ;;  %560 = vmatprep.subr.bf16.mxu1 %v1319_v10  ;;  %v1339_v23 = vld [vmem:[#allocation6 + $0x40] ss:$16 sps:$4 sm:$0xff]   ;;  %v1340_v24 = vld [vmem:[#allocation6 + $0x48] ss:$16 sps:$4 sm:$0xff]   ;;  %v1341_v25 = vld [vmem:[#allocation6 + $0x24] ss:$16 sps:$4 sm:$0xff]  }
  0x31   :  { %v1343_v26 = vld [vmem:[#allocation6 + $0x2c] ss:$16 sps:$4 sm:$0xff]   ;;  %v1345_v27 = vld [vmem:[#allocation6 + $0x20] ss:$16 sps:$4 sm:$0xff]   ;;  %v1346_v28 = vld [vmem:[#allocation6 + $0x28] ss:$16 sps:$4 sm:$0xff]  }
  0x32   :  { %v1347_v29 = vld [vmem:[#allocation6 + $0x4] ss:$16 sps:$4 sm:$0xff]   ;;  %v1349_v30 = vld [vmem:[#allocation6 + $0xc] ss:$16 sps:$4 sm:$0xff]   ;;  %v1351_v31 = vld [vmem:[#allocation6] ss:$16 sps:$4 sm:$0xff]  }
  0x33   :  { %448 = vmatpush1.bf16.msra.mxu0 %v1321_v11  ;;  %561 = vmatpush1.bf16.msra.mxu1 %v1322_v12  ;;  %v1352_v32 = vld [vmem:[#allocation6 + $0x8] ss:$16 sps:$4 sm:$0xff]   ;;  %v1353_v33 = vld [vmem:[#allocation3] sm:$0xff]   ;;  %v1355_v35 = vld [vmem:[#allocation3 + $0x10] sm:$0xff]   ;;  %v867_v42 = vshrl.u32 %v866_v41, 7  ;;  %s1455_s0 = smov [#allocation9]  }
  0x34   :  { %449 = vmatprep.subr.bf16.mxu0 %v1323_v13  ;;  %562 = vmatprep.subr.bf16.mxu1 %v1325_v14  ;;  %v1356_v36 = vld [vmem:[#allocation3 + $0x18] sm:$0xff]   ;;  %v1357_v37 = vld [vmem:[#allocation3 + $0x20] sm:$0xff]   ;;  %v1358_v38 = vld [vmem:[#allocation3 + $0x28] sm:$0xff]   ;;  %s1179_s2 = sshll.u32 %s1455_s0, 4  ;;  %s1180_s2 = int_to_ptr.vmem [resolvable:$true] %s1179_s2 }
  0x35   :  { %v1359_v39 = vld [vmem:[#allocation3 + $0x30] sm:$0xff]   ;;  %v1360_v40 = vld [vmem:[#allocation3 + $0x38] sm:$0xff]   ;;  %v868_v43 = vsub.s32 0, %v867_v42  ;;  %v876_v44 = vsub.s32 2, %v867_v42  ;;  %v872_v45 = vsub.s32 1, %v867_v42  ;;  %v880_v46 = vsub.s32 3, %v867_v42  ;;  %p1426_p2 = scmp.lt.s32.totalorder %s1180_s2, %s1180_s2 }
  0x36   :  { %v864_v47 = vld [vmem:[#allocation8] sm:$0xf]  ;;  %s1421_s30 = scalar_lea.vmem %s1180_s2, 4096 }
  0x37   :  { %450 = vmatpush1.bf16.msra.mxu0 %v1327_v15  ;;  %563 = vmatpush1.bf16.msra.mxu1 %v1328_v16  ;;  %v1504_v48 = vrot.slane %v864_v47, %v868_v43  ;;  %v1506_v49 = vrot.slane %v864_v47, %v876_v44  ;;  %v1508_v50 = vrot.slane %v864_v47, %v872_v45  ;;  %p1422_p1 = scmp.ne.s32.totalorder %s1180_s2, %s1421_s30  ;;  %p1427_p3 = scmp.lt.s32.totalorder %s1421_s30, %s1421_s30 }
  0x38   :  { %451 = vmatprep.subr.bf16.mxu0 %v1329_v17  ;;  %564 = vmatprep.subr.bf16.mxu1 %v1331_v18  ;;  %v1510_v51 = vrot.slane %v864_v47, %v880_v46 }
  0x39   :  { %p1428_p4 = por %p1427_p3, %p1426_p2 }
  0x3b   :  { %452 = vmatpush1.bf16.msra.mxu0 %v1333_v19  ;;  %565 = vmatpush1.bf16.msra.mxu1 %v1334_v20  ;;  %p1429_p5 = pnand %p1428_p4, %p1422_p1 }
  0x3c   :  { %453 = vmatprep.subr.bf16.mxu0 %v1335_v21  ;;  %566 = vmatprep.subr.bf16.mxu1 %v1337_v22 }
  0x3f   :  { %454 = vmatpush1.bf16.msra.mxu0 %v1339_v23  ;;  %567 = vmatpush1.bf16.msra.mxu1 %v1340_v24 }
  0x40   :  { %455 = vmatprep.subr.bf16.mxu0 %v1341_v25  ;;  %568 = vmatprep.subr.bf16.mxu1 %v1343_v26 }
  0x43   :  { %456 = vmatpush1.bf16.msra.mxu0 %v1345_v27  ;;  %569 = vmatpush1.bf16.msra.mxu1 %v1346_v28 }
  0x44   :  { %457 = vmatprep.subr.bf16.mxu0 %v1347_v29  ;;  %570 = vmatprep.subr.bf16.mxu1 %v1349_v30 }
  0x47   :  { %458 = vmatpush1.bf16.msra.mxu0 %v1351_v31  ;;  %571 = vmatpush1.bf16.msra.mxu1 %v1352_v32 }
  0x4a   :  { %476 = vmatmul.mubr.bf16.vlgmr.msra.gmra.mxu0 %v1353_v33  ;;  %589 = vmatmul.mubr.bf16.vlgmr.msra.gmra.mxu1 %v1353_v33 }
  0x4b   :  { %485 = vmatprep.mubr.bf16.mxu0 %v1454_v0  ;;  %598 = vmatprep.mubr.bf16.mxu1 %v1454_v0 }
  0x52   :  { %486 = vmatmul.mubr.bf16.gmra.mxu0 %v1354_v34  ;;  %599 = vmatmul.mubr.bf16.gmra.mxu1 %v1354_v34 }
  0x53   :  { %495 = vmatprep.mubr.bf16.mxu0 %v1454_v0  ;;  %608 = vmatprep.mubr.bf16.mxu1 %v1454_v0 }
  0x5a   :  { %496 = vmatmul.mubr.bf16.gmra.mxu0 %v1355_v35  ;;  %609 = vmatmul.mubr.bf16.gmra.mxu1 %v1355_v35 }
  0x5b   :  { %505 = vmatprep.mubr.bf16.mxu0 %v1454_v0  ;;  %618 = vmatprep.mubr.bf16.mxu1 %v1454_v0 }
  0x62   :  { %506 = vmatmul.mubr.bf16.gmra.mxu0 %v1356_v36  ;;  %619 = vmatmul.mubr.bf16.gmra.mxu1 %v1356_v36 }
  0x63   :  { %515 = vmatprep.mubr.bf16.mxu0 %v1454_v0  ;;  %628 = vmatprep.mubr.bf16.mxu1 %v1454_v0 }
  0x6a   :  { %516 = vmatmul.mubr.bf16.gmra.mxu0 %v1357_v37  ;;  %629 = vmatmul.mubr.bf16.gmra.mxu1 %v1357_v37 }
  0x6b   :  { %525 = vmatprep.mubr.bf16.mxu0 %v1454_v0  ;;  %638 = vmatprep.mubr.bf16.mxu1 %v1454_v0 }
  0x72   :  { %526 = vmatmul.mubr.bf16.gmra.mxu0 %v1358_v38  ;;  %639 = vmatmul.mubr.bf16.gmra.mxu1 %v1358_v38 }
  0x73   :  { %535 = vmatprep.mubr.bf16.mxu0 %v1454_v0  ;;  %648 = vmatprep.mubr.bf16.mxu1 %v1454_v0 }
  0x7a   :  { %536 = vmatmul.mubr.bf16.gmra.mxu0 %v1359_v39  ;;  %649 = vmatmul.mubr.bf16.gmra.mxu1 %v1359_v39 }
  0x7b   :  { %545 = vmatprep.mubr.bf16.mxu0 %v1454_v0  ;;  %658 = vmatprep.mubr.bf16.mxu1 %v1454_v0 }
  0x82   :  { %546 = vmatmul.mubr.bf16.gmra.mxu0 %v1360_v40  ;;  %659 = vmatmul.mubr.bf16.gmra.mxu1 %v1360_v40 }
 0x10a   :  { %v477_v52 = vpop.f32.mrf.mxu0  ;;  %v590_v53 = vpop.f32.mrf.mxu1 }
 0x10b   :  { %v886_v56 = vadd.f32 %v1504_v48, %v477_v52  ;;  %v888_v57 = vadd.f32 %v1506_v49, %v590_v53 }
 0x10c   :  { %v479_v54 = vpop.f32.mrf.mxu0  ;;  %v592_v55 = vpop.f32.mrf.mxu1 }
 0x10d   :  { %v887_v58 = vadd.f32 %v1508_v50, %v479_v54  ;;  %v889_v59 = vadd.f32 %v1510_v51, %v592_v55 }
 0x10e   :  { %v481_v60 = vpop.f32.mrf.mxu0  ;;  %v594_v61 = vpop.f32.mrf.mxu1 }
 0x10f   :  { %v1264_v62 = vpack.c.bf16 %v887_v58, %v886_v56  ;;  %v1265_v63 = vpack.c.bf16 %v889_v59, %v888_v57  ;;  %v890_v2 = vadd.f32 %v1504_v48, %v481_v60  ;;  %v892_v3 = vadd.f32 %v1506_v49, %v594_v61 }
 0x110   :  { %v483_v0 = vpop.f32.mrf.mxu0  ;;  %v596_v1 = vpop.f32.mrf.mxu1 }
 0x111   :  { %1142 = vst [vmem:[#allocation9] sm:$0xff] %v1264_v62  ;;  %1143 = vst [vmem:[#allocation9 + $0x8] sm:$0xff] %v1265_v63  ;;  %v891_v4 = vadd.f32 %v1508_v50, %v483_v0  ;;  %v893_v5 = vadd.f32 %v1510_v51, %v596_v1 }
 0x112   :  { %v487_v6 = vpop.f32.mrf.mxu0  ;;  %v600_v7 = vpop.f32.mrf.mxu1 }
 0x113   :  { %v1266_v8 = vpack.c.bf16 %v891_v4, %v890_v2  ;;  %v1267_v9 = vpack.c.bf16 %v893_v5, %v892_v3  ;;  %v894_v12 = vadd.f32 %v1504_v48, %v487_v6  ;;  %v896_v13 = vadd.f32 %v1506_v49, %v600_v7 }
 0x114   :  { %v489_v10 = vpop.f32.mrf.mxu0  ;;  %v602_v11 = vpop.f32.mrf.mxu1 }
 0x115   :  { %1144 = vst [vmem:[#allocation9 + $0x10] sm:$0xff] %v1266_v8  ;;  %1145 = vst [vmem:[#allocation9 + $0x18] sm:$0xff] %v1267_v9  ;;  %v895_v14 = vadd.f32 %v1508_v50, %v489_v10  ;;  %v897_v15 = vadd.f32 %v1510_v51, %v602_v11 }
 0x116   :  { %v491_v16 = vpop.f32.mrf.mxu0  ;;  %v604_v17 = vpop.f32.mrf.mxu1 }
 0x117   :  { %v1268_v18 = vpack.c.bf16 %v895_v14, %v894_v12  ;;  %v1269_v19 = vpack.c.bf16 %v897_v15, %v896_v13  ;;  %v898_v22 = vadd.f32 %v1504_v48, %v491_v16  ;;  %v900_v23 = vadd.f32 %v1506_v49, %v604_v17 }
 0x118   :  { %v493_v20 = vpop.f32.mrf.mxu0  ;;  %v606_v21 = vpop.f32.mrf.mxu1 }
 0x119   :  { %1146 = vst [vmem:[#allocation9 + $0x20] sm:$0xff] %v1268_v18  ;;  %1147 = vst [vmem:[#allocation9 + $0x28] sm:$0xff] %v1269_v19  ;;  %v899_v24 = vadd.f32 %v1508_v50, %v493_v20  ;;  %v901_v25 = vadd.f32 %v1510_v51, %v606_v21 }
 0x11a   :  { %v497_v26 = vpop.f32.mrf.mxu0  ;;  %v610_v27 = vpop.f32.mrf.mxu1 }
 0x11b   :  { %v1270_v28 = vpack.c.bf16 %v899_v24, %v898_v22  ;;  %v1271_v29 = vpack.c.bf16 %v901_v25, %v900_v23  ;;  %v902_v32 = vadd.f32 %v1504_v48, %v497_v26  ;;  %v904_v33 = vadd.f32 %v1506_v49, %v610_v27 }
 0x11c   :  { %v499_v30 = vpop.f32.mrf.mxu0  ;;  %v612_v31 = vpop.f32.mrf.mxu1 }
 0x11d   :  { %1148 = vst [vmem:[#allocation9 + $0x30] sm:$0xff] %v1270_v28  ;;  %1149 = vst [vmem:[#allocation9 + $0x38] sm:$0xff] %v1271_v29  ;;  %v903_v34 = vadd.f32 %v1508_v50, %v499_v30  ;;  %v905_v35 = vadd.f32 %v1510_v51, %v612_v31 }
 0x11e   :  { %v501_v36 = vpop.f32.mrf.mxu0  ;;  %v614_v37 = vpop.f32.mrf.mxu1 }
 0x11f   :  { %v1272_v38 = vpack.c.bf16 %v903_v34, %v902_v32  ;;  %v1273_v39 = vpack.c.bf16 %v905_v35, %v904_v33  ;;  %v906_v42 = vadd.f32 %v1504_v48, %v501_v36  ;;  %v908_v43 = vadd.f32 %v1506_v49, %v614_v37 }
 0x120   :  { %v503_v40 = vpop.f32.mrf.mxu0  ;;  %v616_v41 = vpop.f32.mrf.mxu1 }
 0x121   :  { %1150 = vst [vmem:[#allocation9 + $0x40] sm:$0xff] %v1272_v38  ;;  %1151 = vst [vmem:[#allocation9 + $0x48] sm:$0xff] %v1273_v39  ;;  %v907_v44 = vadd.f32 %v1508_v50, %v503_v40  ;;  %v909_v45 = vadd.f32 %v1510_v51, %v616_v41 }
 0x122   :  { %v507_v46 = vpop.f32.mrf.mxu0  ;;  %v620_v47 = vpop.f32.mrf.mxu1 }
 0x123   :  { %v1274_v52 = vpack.c.bf16 %v907_v44, %v906_v42  ;;  %v1275_v53 = vpack.c.bf16 %v909_v45, %v908_v43  ;;  %v910_v56 = vadd.f32 %v1504_v48, %v507_v46  ;;  %v912_v57 = vadd.f32 %v1506_v49, %v620_v47 }
 0x124   :  { %v509_v54 = vpop.f32.mrf.mxu0  ;;  %v622_v55 = vpop.f32.mrf.mxu1 }
 0x125   :  { %1152 = vst [vmem:[#allocation9 + $0x50] sm:$0xff] %v1274_v52  ;;  %1153 = vst [vmem:[#allocation9 + $0x58] sm:$0xff] %v1275_v53  ;;  %v911_v58 = vadd.f32 %v1508_v50, %v509_v54  ;;  %v913_v59 = vadd.f32 %v1510_v51, %v622_v55 }
 0x126   :  { %v511_v60 = vpop.f32.mrf.mxu0  ;;  %v624_v61 = vpop.f32.mrf.mxu1 }
 0x127   :  { %v1276_v62 = vpack.c.bf16 %v911_v58, %v910_v56  ;;  %v1277_v63 = vpack.c.bf16 %v913_v59, %v912_v57  ;;  %v914_v2 = vadd.f32 %v1504_v48, %v511_v60  ;;  %v916_v3 = vadd.f32 %v1506_v49, %v624_v61 }
 0x128   :  { %v513_v0 = vpop.f32.mrf.mxu0  ;;  %v626_v1 = vpop.f32.mrf.mxu1 }
 0x129   :  { %1154 = vst [vmem:[#allocation9 + $0x60] sm:$0xff] %v1276_v62  ;;  %1155 = vst [vmem:[#allocation9 + $0x68] sm:$0xff] %v1277_v63  ;;  %v915_v4 = vadd.f32 %v1508_v50, %v513_v0  ;;  %v917_v5 = vadd.f32 %v1510_v51, %v626_v1 }
 0x12a   :  { %v517_v6 = vpop.f32.mrf.mxu0  ;;  %v630_v7 = vpop.f32.mrf.mxu1 }
 0x12b   :  { %v1278_v8 = vpack.c.bf16 %v915_v4, %v914_v2  ;;  %v1279_v9 = vpack.c.bf16 %v917_v5, %v916_v3  ;;  %v918_v12 = vadd.f32 %v1504_v48, %v517_v6  ;;  %v920_v13 = vadd.f32 %v1506_v49, %v630_v7 }
 0x12c   :  { %v519_v10 = vpop.f32.mrf.mxu0  ;;  %v632_v11 = vpop.f32.mrf.mxu1 }
 0x12d   :  { %1156 = vst [vmem:[#allocation9 + $0x70] sm:$0xff] %v1278_v8  ;;  %1157 = vst [vmem:[#allocation9 + $0x78] sm:$0xff] %v1279_v9  ;;  %v919_v14 = vadd.f32 %v1508_v50, %v519_v10  ;;  %v921_v15 = vadd.f32 %v1510_v51, %v632_v11 }
 0x12e   :  { %v521_v16 = vpop.f32.mrf.mxu0  ;;  %v634_v17 = vpop.f32.mrf.mxu1 }
 0x12f   :  { %v1280_v18 = vpack.c.bf16 %v919_v14, %v918_v12  ;;  %v1281_v19 = vpack.c.bf16 %v921_v15, %v920_v13  ;;  %v922_v22 = vadd.f32 %v1504_v48, %v521_v16  ;;  %v924_v23 = vadd.f32 %v1506_v49, %v634_v17 }
 0x130   :  { %v523_v20 = vpop.f32.mrf.mxu0  ;;  %v636_v21 = vpop.f32.mrf.mxu1 }
 0x131   :  { %1158 = vst [vmem:[#allocation9 + $0x80] sm:$0xff] %v1280_v18  ;;  %1159 = vst [vmem:[#allocation9 + $0x88] sm:$0xff] %v1281_v19  ;;  %v923_v24 = vadd.f32 %v1508_v50, %v523_v20  ;;  %v925_v25 = vadd.f32 %v1510_v51, %v636_v21 }
 0x132   :  { %v527_v26 = vpop.f32.mrf.mxu0  ;;  %v640_v27 = vpop.f32.mrf.mxu1 }
 0x133   :  { %v1282_v28 = vpack.c.bf16 %v923_v24, %v922_v22  ;;  %v1283_v29 = vpack.c.bf16 %v925_v25, %v924_v23  ;;  %v926_v32 = vadd.f32 %v1504_v48, %v527_v26  ;;  %v928_v33 = vadd.f32 %v1506_v49, %v640_v27 }
 0x134   :  { %v529_v30 = vpop.f32.mrf.mxu0  ;;  %v642_v31 = vpop.f32.mrf.mxu1 }
 0x135   :  { %1160 = vst [vmem:[#allocation9 + $0x90] sm:$0xff] %v1282_v28  ;;  %1161 = vst [vmem:[#allocation9 + $0x98] sm:$0xff] %v1283_v29  ;;  %v927_v34 = vadd.f32 %v1508_v50, %v529_v30  ;;  %v929_v35 = vadd.f32 %v1510_v51, %v642_v31 }
 0x136   :  { %v531_v36 = vpop.f32.mrf.mxu0  ;;  %v644_v37 = vpop.f32.mrf.mxu1 }
 0x137   :  { %v1284_v38 = vpack.c.bf16 %v927_v34, %v926_v32  ;;  %v1285_v39 = vpack.c.bf16 %v929_v35, %v928_v33  ;;  %v930_v42 = vadd.f32 %v1504_v48, %v531_v36  ;;  %v932_v43 = vadd.f32 %v1506_v49, %v644_v37 }
 0x138   :  { %v533_v40 = vpop.f32.mrf.mxu0  ;;  %v646_v41 = vpop.f32.mrf.mxu1 }
 0x139   :  { %1162 = vst [vmem:[#allocation9 + $0xa0] sm:$0xff] %v1284_v38  ;;  %1163 = vst [vmem:[#allocation9 + $0xa8] sm:$0xff] %v1285_v39  ;;  %v931_v44 = vadd.f32 %v1508_v50, %v533_v40  ;;  %v933_v45 = vadd.f32 %v1510_v51, %v646_v41 }
 0x13a   :  { %v537_v46 = vpop.f32.mrf.mxu0  ;;  %v650_v47 = vpop.f32.mrf.mxu1 }
 0x13b   :  { %v1286_v52 = vpack.c.bf16 %v931_v44, %v930_v42  ;;  %v1287_v53 = vpack.c.bf16 %v933_v45, %v932_v43  ;;  %v934_v56 = vadd.f32 %v1504_v48, %v537_v46  ;;  %v936_v57 = vadd.f32 %v1506_v49, %v650_v47 }
 0x13c   :  { %v539_v54 = vpop.f32.mrf.mxu0  ;;  %v652_v55 = vpop.f32.mrf.mxu1 }
 0x13d   :  { %1164 = vst [vmem:[#allocation9 + $0xb0] sm:$0xff] %v1286_v52  ;;  %1165 = vst [vmem:[#allocation9 + $0xb8] sm:$0xff] %v1287_v53  ;;  %v935_v58 = vadd.f32 %v1508_v50, %v539_v54  ;;  %v937_v59 = vadd.f32 %v1510_v51, %v652_v55 }
 0x13e   :  { %v541_v60 = vpop.f32.mrf.mxu0  ;;  %v654_v61 = vpop.f32.mrf.mxu1 }
 0x13f   :  { %v1288_v62 = vpack.c.bf16 %v935_v58, %v934_v56  ;;  %v1289_v63 = vpack.c.bf16 %v937_v59, %v936_v57  ;;  %v938_v2 = vadd.f32 %v1504_v48, %v541_v60  ;;  %v940_v3 = vadd.f32 %v1506_v49, %v654_v61 }
 0x140   :  { %v543_v0 = vpop.f32.mrf.mxu0  ;;  %v656_v1 = vpop.f32.mrf.mxu1 }
 0x141   :  { %1166 = vst [vmem:[#allocation9 + $0xc0] sm:$0xff] %v1288_v62  ;;  %1167 = vst [vmem:[#allocation9 + $0xc8] sm:$0xff] %v1289_v63  ;;  %v939_v4 = vadd.f32 %v1508_v50, %v543_v0  ;;  %v941_v5 = vadd.f32 %v1510_v51, %v656_v1 }
 0x142   :  { %v547_v6 = vpop.f32.mrf.mxu0  ;;  %v660_v7 = vpop.f32.mrf.mxu1 }
 0x143   :  { %v1290_v8 = vpack.c.bf16 %v939_v4, %v938_v2  ;;  %v1291_v9 = vpack.c.bf16 %v941_v5, %v940_v3  ;;  %v942_v12 = vadd.f32 %v1504_v48, %v547_v6  ;;  %v944_v13 = vadd.f32 %v1506_v49, %v660_v7 }
 0x144   :  { %v549_v10 = vpop.f32.mrf.mxu0  ;;  %v662_v11 = vpop.f32.mrf.mxu1 }
 0x145   :  { %1168 = vst [vmem:[#allocation9 + $0xd0] sm:$0xff] %v1290_v8  ;;  %1169 = vst [vmem:[#allocation9 + $0xd8] sm:$0xff] %v1291_v9  ;;  %v943_v14 = vadd.f32 %v1508_v50, %v549_v10  ;;  %v945_v15 = vadd.f32 %v1510_v51, %v662_v11 }
 0x146   :  { %v551_v16 = vpop.f32.mrf.mxu0  ;;  %v664_v17 = vpop.f32.mrf.mxu1 }
 0x147   :  { %v1292_v18 = vpack.c.bf16 %v943_v14, %v942_v12  ;;  %v1293_v19 = vpack.c.bf16 %v945_v15, %v944_v13  ;;  %v946_v22 = vadd.f32 %v1504_v48, %v551_v16  ;;  %v948_v23 = vadd.f32 %v1506_v49, %v664_v17 }
 0x148   :  { %v553_v20 = vpop.f32.mrf.mxu0  ;;  %v666_v21 = vpop.f32.mrf.mxu1 }
 0x149   :  { %1170 = vst [vmem:[#allocation9 + $0xe0] sm:$0xff] %v1292_v18  ;;  %1171 = vst [vmem:[#allocation9 + $0xe8] sm:$0xff] %v1293_v19  ;;  %v947_v24 = vadd.f32 %v1508_v50, %v553_v20  ;;  %v949_v25 = vadd.f32 %v1510_v51, %v666_v21 }
 0x14b   :  { %v1294_v26 = vpack.c.bf16 %v947_v24, %v946_v22  ;;  %v1295_v27 = vpack.c.bf16 %v949_v25, %v948_v23 }
 0x14d   :  { %1172 = vst [vmem:[#allocation9 + $0xf0] sm:$0xff] %v1294_v26  ;;  %1173 = vst [vmem:[#allocation9 + $0xf8] sm:$0xff] %v1295_v27 }
 0x14e   :  { %1432 = shalt.err (!%p1429_p5)
}
 0x14f   :  { %1185 = dma.vmem_to_hbm [thread:$0]  %s1180_s2, 4096, %s1585_s3, [#allocation5], %s1448_s15, %s1448_s15, %s1449_s16  }
 0x150   :  { %1445 = dma.done.wait [#allocation5], 4096  }
 0x151   :  { %1446 = vsyncadd [#allocation5], 4294963200 }
 0x152   :  { %1189 = vsyncpa [#allocation4], 1 }
 0x153   :  { %1190 = vsyncpa [#allocation7], 1 }
 0x154   :  { %1191 = vsyncpa [#allocation5], 1 }

</bundles_post_ra>
